<compile_context>
chip_gen: v7x
topology: tpu7x:2x2x1
jax: 0.10.0
libtpu: 0.0.40
codegen_flags: <defaults>
</compile_context>

<pallas_src>
import functools

import jax
import jax.numpy as jnp
from jax.experimental import pallas as pl
from jax.experimental.pallas import tpu as pltpu

EMB_SIZE = 64
N_LAYERS = 3
HYPER_LAYERS = 1


def _round_up(x, m):
    return (x + m - 1) // m * m


def _vmem_capacity_bytes():
    try:
        return int(pltpu.get_tpu_info().vmem_capacity_bytes)
    except Exception:
        return 64 * 1024 * 1024  # conservative fallback (v7x per-TensorCore)


def _spmm_mean_kernel(adj_ref, ego_in_ref, ego_out_ref, d_out_ref, out_ref,
                      acc_ref, *, ego_resident):
    """One bipartite half of the LightGCN propagation + fused 4-layer mean.

    adj_ref:     (tm, tk)        int8 binary adjacency tile (row tile i, k-slice k)
    ego_in_ref:  (K_pad, D) bf16 contraction-side ego pre-scaled by d_in^{-1/2}
                 (resident, constant block index)  OR  (tk, D) per-k tile
    ego_out_ref: (tm, D)   f32   ego rows of this output row tile (for the mean)
    d_out_ref:   (tm, 1)   f32   d_out^{-1/2} for this output row tile
    out_ref:     (tm, 2D)  f32   lane-dense slab [A_norm @ ego | mean]
    acc_ref:     (tm, D)   f32   accumulator scratch
    """
    k = pl.program_id(1)
    tk = adj_ref.shape[1]

    @pl.when(k == 0)
    def _init():
        acc_ref[...] = jnp.zeros_like(acc_ref)

    if ego_resident:
        start = pl.multiple_of(k * tk, tk)
        ego_k = ego_in_ref[pl.ds(start, tk), :]
    else:
        ego_k = ego_in_ref[...]

    # int8 -> bf16 upcast rides on otherwise-idle VPU slots; MXU does the bf16 matmul.
    acc_ref[...] += jnp.dot(adj_ref[...].astype(jnp.bfloat16), ego_k,
                            preferred_element_type=jnp.float32)

    @pl.when(k == pl.num_programs(1) - 1)
    def _finalize():
        ae = acc_ref[...] * d_out_ref[...]            # exact D_out^{-1/2}, applied once
        mean = (ego_out_ref[...] + 3.0 * ae) * 0.25   # mean over [ego, A@ego, A@ego, A@ego]
        out_ref[...] = jnp.concatenate([ae, mean], axis=-1)


def _half_spmm(adj_i8, ego_in_bf16, ego_out_f32, d_out_f32, *, tm, tk):
    """Rows = [d_out * (adj_bin @ ego_in_scaled) | mean] for one side of the bipartite graph."""
    M, K = adj_i8.shape
    D = ego_out_f32.shape[1]
    D2 = 2 * D

    # Large tiles; pad M/K up to tile multiples (never shrink tiles to divisors of N).
    tm_eff = min(tm, _round_up(M, 32))     # 32-row granularity (int8 sublane packing)
    tk_eff = min(tk, _round_up(K, 128))    # 128-lane granularity
    M_pad = _round_up(M, tm_eff)
    K_pad = _round_up(K, tk_eff)

    adj_p = jnp.pad(adj_i8, ((0, M_pad - M), (0, K_pad - K)))
    ego_in_p = jnp.pad(ego_in_bf16, ((0, K_pad - K), (0, 0)))
    ego_out_p = jnp.pad(ego_out_f32, ((0, M_pad - M), (0, 0)))
    d_out_p = jnp.pad(d_out_f32, ((0, M_pad - M), (0, 0)))

    grid = (M_pad // tm_eff, K_pad // tk_eff)

    cap = _vmem_capacity_bytes()
    # Keep the contraction-side ego resident in VMEM (one DMA total) when it fits comfortably.
    ego_resident_bytes = 2 * K_pad * D * 2            # bf16, conservatively count 2 buffers
    ego_resident = ego_resident_bytes <= min(16 << 20, cap // 4)

    if ego_resident:
        ego_in_spec = pl.BlockSpec((K_pad, D), lambda i, k: (0, 0))
        ego_in_bytes = ego_resident_bytes
    else:
        ego_in_spec = pl.BlockSpec((tk_eff, D), lambda i, k: (k, 0))
        ego_in_bytes = 2 * tk_eff * D * 2

    needed = (2 * tm_eff * tk_eff * 1                 # int8 adjacency (double-buffered)
              + ego_in_bytes                          # contraction-side ego (bf16)
              + 2 * tm_eff * D * 4                    # ego rows for the mean (f32)
              + 2 * max(tm_eff, 8) * 128 * 4          # d_out tiles (lane-padded layout)
              + 2 * tm_eff * D2 * 4                   # output slab (f32)
              + tm_eff * D * 4)                       # accumulator scratch
    vmem_limit = int(max(needed + (4 << 20), 16 << 20))
    vmem_limit = int(min(vmem_limit, (cap * 3) // 4))  # never exceed the chip (v7x: 64 MiB)

    kernel = functools.partial(_spmm_mean_kernel, ego_resident=ego_resident)

    out = pl.pallas_call(
        kernel,
        out_shape=jax.ShapeDtypeStruct((M_pad, D2), jnp.float32),
        grid_spec=pltpu.PrefetchScalarGridSpec(
            num_scalar_prefetch=0,
            grid=grid,
            in_specs=[
                # Dominant HBM stream; default Buffered(2) suffices — bump to pl.Buffered(3)
                # only if a trace shows exposed adjacency DMA.
                pl.BlockSpec((tm_eff, tk_eff), lambda i, k: (i, k)),
                ego_in_spec,
                pl.BlockSpec((tm_eff, D), lambda i, k: (i, 0)),
                pl.BlockSpec((tm_eff, 1), lambda i, k: (i, 0)),
            ],
            out_specs=pl.BlockSpec((tm_eff, D2), lambda i, k: (i, 0)),
            scratch_shapes=[pltpu.VMEM((tm_eff, D), jnp.float32)],
        ),
        compiler_params=pltpu.CompilerParams(
            # Row tiles shard across TensorCores (v7x megacore); graphs with M > tm
            # naturally produce >= 2 parallel row tiles.
            dimension_semantics=("parallel", "arbitrary"),
            vmem_limit_bytes=vmem_limit,
        ),
    )(adj_p, ego_in_p, ego_out_p, d_out_p)

    return out[:M]


def fedgnn_forward(r_binary, user_emb, item_emb, *, tm=512, tk=4096):
    """fedgnn.forward() hot path.

    r_binary: (n_users, n_items) user-item interaction matrix (0/1).  The symmetric-
              normalized bipartite adjacency D^{-1/2} [[0,R],[R^T,0]] D^{-1/2} is implied
              and never materialized densely.
    Returns (user_all_embeddings, item_all_embeddings, embeddings_list).
    """
    n_users, D = user_emb.shape
    n_items = item_emb.shape[0]

    user_f32 = user_emb.astype(jnp.float32)
    item_f32 = item_emb.astype(jnp.float32)

    r_bool = (r_binary != 0)
    deg_u = jnp.sum(r_bool, axis=1).astype(jnp.float32)
    deg_i = jnp.sum(r_bool, axis=0).astype(jnp.float32)
    du = jnp.where(deg_u > 0, jax.lax.rsqrt(jnp.maximum(deg_u, 1.0)), 0.0)
    di = jnp.where(deg_i > 0, jax.lax.rsqrt(jnp.maximum(deg_i, 1.0)), 0.0)

    # Binary int8 adjacency streams (exact 0/1; half the bytes of bf16, quarter of f32).
    r_i8 = r_bool.astype(jnp.int8)
    rt_i8 = r_bool.T.astype(jnp.int8)   # one-time transpose; still << a dense NxN copy

    # user rows of A@ego: du * (R @ (di * item));  item rows: di * (R^T @ (du * user)).
    out_u = _half_spmm(r_i8, (item_f32 * di[:, None]).astype(jnp.bfloat16),
                       user_f32, du[:, None], tm=tm, tk=tk)
    out_i = _half_spmm(rt_i8, (user_f32 * du[:, None]).astype(jnp.bfloat16),
                       item_f32, di[:, None], tm=tm, tk=tk)

    layer_emb = jnp.concatenate([out_u[:, :D], out_i[:, :D]], axis=0)   # A_norm @ ego
    user_all = out_u[:, D:]
    item_all = out_i[:, D:]

    ego_f32 = jnp.concatenate([user_f32, item_f32], axis=0)
    n_prop = max(N_LAYERS, HYPER_LAYERS * 2)   # = 3; ego is never updated in the ref code
    embeddings_list = [ego_f32] + [layer_emb] * n_prop
    return user_all, item_all, embeddings_list


def xavier_uniform(key, shape):
    fan_in, fan_out = shape
    bound = jnp.sqrt(6.0 / (fan_in + fan_out))
    return jax.random.uniform(key, shape, jnp.float32, -bound, bound)


if __name__ == "__main__":
    key = jax.random.PRNGKey(0)
    k_adj, k_user, k_item = jax.random.split(key, 3)

    n_users, n_items = 48, 80            # small toy graph, emb_size = 64
    user_emb = xavier_uniform(k_user, (n_users, EMB_SIZE))
    item_emb = xavier_uniform(k_item, (n_items, EMB_SIZE))
    r = jax.random.bernoulli(k_adj, p=0.15, shape=(n_users, n_items)).astype(jnp.float32)

    user_all, item_all, emb_list = fedgnn_forward(r, user_emb, item_emb)
    jax.block_until_ready((user_all, item_all, emb_list))

    # Plain-JAX f32 reference: dense normalized adjacency built only for this check.
    N = n_users + n_items
    adj = jnp.zeros((N, N), jnp.float32)
    adj = adj.at[:n_users, n_users:].set(r)
    adj = adj.at[n_users:, :n_users].set(r.T)
    deg = adj.sum(axis=1)
    d_inv_sqrt = jnp.where(deg > 0, 1.0 / jnp.sqrt(jnp.maximum(deg, 1e-12)), 0.0)
    norm_adj = adj * d_inv_sqrt[:, None] * d_inv_sqrt[None, :]
    ego = jnp.concatenate([user_emb, item_emb], axis=0)
    ae_ref = norm_adj @ ego
    mean_ref = (ego + 3.0 * ae_ref) / 4.0

    # Adjacency entries are exact now (binary int8 + factored d^{-1/2}); only the small
    # ego stream is bf16-rounded, so the tolerance is tighter than the previous version.
    assert jnp.allclose(emb_list[1], ae_ref, atol=1e-2, rtol=1e-2)
    assert jnp.allclose(jnp.concatenate([user_all, item_all], axis=0),
                        mean_ref, atol=1e-2, rtol=1e-2)
    assert user_all.shape == (n_users, EMB_SIZE)
    assert item_all.shape == (n_items, EMB_SIZE)
    assert len(emb_list) == 1 + max(N_LAYERS, HYPER_LAYERS * 2)

    print("KERNEL_OK")
</pallas_src>

<mosaic_0001>
module attributes {stable_mosaic.version = 11 : i64} {
  func.func @_spmm_mean_kernel(%arg0: i32, %arg1: i32, %arg2: memref<64x128xi8, #tpu.memory_space<vmem>>, %arg3: memref<128x64xbf16, #tpu.memory_space<vmem>>, %arg4: memref<64x64xf32, #tpu.memory_space<vmem>>, %arg5: memref<64x1xf32, #tpu.memory_space<vmem>>, %arg6: memref<64x128xf32, #tpu.memory_space<vmem>>, %arg7: memref<64x64xf32, #tpu.memory_space<vmem>>) attributes {dimension_semantics = [#tpu.dimension_semantics<parallel>, #tpu.dimension_semantics<arbitrary>], iteration_bounds = array<i64: 1, 1>, scalar_prefetch = 0 : i64, scratch_operands = 1 : i64, tpu.core_type = #tpu.core_type<tc>, window_params = [{transform_indices = @transform_0, window_bounds = array<i64: 64, 128>}, {pipeline_mode = #tpu.pipeline_mode<synchronous>, transform_indices = @transform_1, window_bounds = array<i64: 128, 64>}, {transform_indices = @transform_2, window_bounds = array<i64: 64, 64>}, {transform_indices = @transform_3, window_bounds = array<i64: 64, 1>}, {transform_indices = @transform_4, window_bounds = array<i64: 64, 128>}]} {
    %c0_i32 = arith.constant 0 : i32
    %0 = arith.cmpi eq, %arg1, %c0_i32 : i32
    %1 = arith.extui %0 : i1 to i32
    %c0_i32_0 = arith.constant 0 : i32
    %2 = arith.cmpi ne, %1, %c0_i32_0 : i32
    scf.if %2 {
      %cst_9 = arith.constant 0.000000e+00 : f32
      %16 = vector.broadcast %cst_9 : f32 to vector<64x64xf32>
      %c0_10 = arith.constant 0 : index
      %c0_11 = arith.constant 0 : index
      %17 = vector.load %arg7[%c0_10, %c0_11] : memref<64x64xf32, #tpu.memory_space<vmem>>, vector<64x64xf32>
      tpu.vector_store %arg7[%c0_10, %c0_11], %16 {strides = array<i32>} : memref<64x64xf32, #tpu.memory_space<vmem>>, vector<64x64xf32>,
    } else {
    }
    %c128_i32 = arith.constant 128 : i32
    %3 = arith.muli %arg1, %c128_i32 : i32
    %4 = tpu.assume_multiple %3, 128 : i32
    %5 = arith.index_cast %4 : i32 to index
    %c0 = arith.constant 0 : index
    %6 = vector.load %arg3[%5, %c0] : memref<128x64xbf16, #tpu.memory_space<vmem>>, vector<128x64xbf16>
    %c0_1 = arith.constant 0 : index
    %c0_2 = arith.constant 0 : index
    %7 = vector.load %arg7[%c0_1, %c0_2] : memref<64x64xf32, #tpu.memory_space<vmem>>, vector<64x64xf32>
    %c0_3 = arith.constant 0 : index
    %c0_4 = arith.constant 0 : index
    %8 = vector.load %arg2[%c0_3, %c0_4] : memref<64x128xi8, #tpu.memory_space<vmem>>, vector<64x128xi8>
    %9 = arith.sitofp %8 : vector<64x128xi8> to vector<64x128xbf16>
    %cst = arith.constant dense<0.000000e+00> : vector<64x64xf32>
    %10 = tpu.matmul %9, %6, %cst {dimension_numbers = #tpu.dot_dimension_numbers<[1], [0], [0], [1], [0, 0, 1, 1], [], []>} : vector<64x128xbf16>, vector<128x64xbf16>, vector<64x64xf32> -> vector<64x64xf32>
    %11 = arith.addf %7, %10 : vector<64x64xf32>
    %c0_5 = arith.constant 0 : index
    %c0_6 = arith.constant 0 : index
    %12 = vector.load %arg7[%c0_5, %c0_6] : memref<64x64xf32, #tpu.memory_space<vmem>>, vector<64x64xf32>
    tpu.vector_store %arg7[%c0_5, %c0_6], %11 {strides = array<i32>} : memref<64x64xf32, #tpu.memory_space<vmem>>, vector<64x64xf32>,
    %c0_i32_7 = arith.constant 0 : i32
    %13 = arith.cmpi eq, %arg1, %c0_i32_7 : i32
    %14 = arith.extui %13 : i1 to i32
    %c0_i32_8 = arith.constant 0 : i32
    %15 = arith.cmpi ne, %14, %c0_i32_8 : i32
    scf.if %15 {
      %c0_9 = arith.constant 0 : index
      %c0_10 = arith.constant 0 : index
      %16 = vector.load %arg7[%c0_9, %c0_10] : memref<64x64xf32, #tpu.memory_space<vmem>>, vector<64x64xf32>
      %c0_11 = arith.constant 0 : index
      %c0_12 = arith.constant 0 : index
      %17 = vector.load %arg5[%c0_11, %c0_12] : memref<64x1xf32, #tpu.memory_space<vmem>>, vector<64x1xf32>
      %18 = vector.broadcast %17 : vector<64x1xf32> to vector<64x64xf32>
      %19 = arith.mulf %16, %18 : vector<64x64xf32>
      %c0_13 = arith.constant 0 : index
      %c0_14 = arith.constant 0 : index
      %20 = vector.load %arg4[%c0_13, %c0_14] : memref<64x64xf32, #tpu.memory_space<vmem>>, vector<64x64xf32>
      %cst_15 = arith.constant 3.000000e+00 : f32
      %21 = vector.broadcast %cst_15 : f32 to vector<64x64xf32>
      %22 = arith.mulf %21, %19 : vector<64x64xf32>
      %23 = arith.addf %20, %22 : vector<64x64xf32>
      %cst_16 = arith.constant 2.500000e-01 : f32
      %24 = vector.broadcast %cst_16 : f32 to vector<64x64xf32>
      %25 = arith.mulf %23, %24 : vector<64x64xf32>
      %26 = tpu.concatenate %19, %25 in 1 : vector<64x64xf32>, vector<64x64xf32> -> vector<64x128xf32>
      %c0_17 = arith.constant 0 : index
      %c0_18 = arith.constant 0 : index
      %27 = vector.load %arg6[%c0_17, %c0_18] : memref<64x128xf32, #tpu.memory_space<vmem>>, vector<64x128xf32>
      tpu.vector_store %arg6[%c0_17, %c0_18], %26 {strides = array<i32>} : memref<64x128xf32, #tpu.memory_space<vmem>>, vector<64x128xf32>,
    } else {
    }
    return
  }
  func.func @transform_0(%arg0: i32, %arg1: i32) -> (i32, i32) {
    %c0_i32 = arith.constant 0 : i32
    return %arg0, %arg1 : i32, i32
  }
  func.func @transform_1(%arg0: i32, %arg1: i32) -> (i32, i32) {
    %c0_i32 = arith.constant 0 : i32
    %c0_i32_0 = arith.constant 0 : i32
    %c0_i32_1 = arith.constant 0 : i32
    return %c0_i32, %c0_i32_0 : i32, i32
  }
  func.func @transform_2(%arg0: i32, %arg1: i32) -> (i32, i32) {
    %c0_i32 = arith.constant 0 : i32
    %c0_i32_0 = arith.constant 0 : i32
    return %arg0, %c0_i32 : i32, i32
  }
  func.func @transform_3(%arg0: i32, %arg1: i32) -> (i32, i32) {
    %c0_i32 = arith.constant 0 : i32
    %c0_i32_0 = arith.constant 0 : i32
    return %arg0, %c0_i32 : i32, i32
  }
  func.func @transform_4(%arg0: i32, %arg1: i32) -> (i32, i32) {
    %c0_i32 = arith.constant 0 : i32
    %c0_i32_0 = arith.constant 0 : i32
    return %arg0, %c0_i32 : i32, i32
  }
}

</mosaic_0001>

<bundles_post_ra>
// kernel: tpu_custom_call.1
= control target key start
LH: loop header
LB: loop body
LE: loop exit
PB: predicated region body
PF: predicated region fallthrough
CT: control target
= control target key end

     0   :  { %v462_v2 = vmov 0   ;;  %s611_s0 = inlined_call_operand.vmem [shape: s8[64,128], index: 0, kind: input, shape index: {}]   ;;  %s612_s1 = inlined_call_operand.vmem [shape: bf16[128,64], index: 1, kind: input, shape index: {}]   ;;  %s613_s2 = inlined_call_operand.vmem [shape: f32[64,64], index: 2, kind: input, shape index: {}]   ;;  %s614_s3 = inlined_call_operand.vmem [shape: f32[64,1], index: 3, kind: input, shape index: {}]   ;;  %s615_s4 = inlined_call_operand.hbm [shape: f32[64,128], index: 4, kind: output, shape index: {}]  }
   0x1   :  { %v430_v0 = vld [vmem:[%s612_s1] sm:$0xff]   ;;  %v431_v1 = vld [vmem:[%s612_s1 + $0x8] sm:$0xff]   ;;  %429 = vset.pattern.permute.xlu1 %v462_v2  ;;  %428 = vset.pattern.permute.xlu0 %v462_v2  ;;  %v432_v3 = vld [vmem:[%s612_s1 + $0x10] sm:$0xff]  }
   0x2   :  { %382 = vmatprep.subr.bf16.mxu0 %v430_v0  ;;  %406 = vmatprep.subr.bf16.mxu1 %v430_v0  ;;  %v433_v4 = vld [vmem:[%s612_s1 + $0x18] sm:$0xff]   ;;  %v61_v5 = vld [vmem:[%s611_s0] sm:$0xff]  ;;  %v62_v6 = vld [vmem:[%s611_s0 + $0x8] sm:$0xff] }
   0x3   :  { %383 = vmatpush3.bf16.msra.mxu0 %v430_v0  ;;  %414 = vmatpush3.bf16.msra.mxu1 %v430_v0  ;;  %v210_v7 = vld [vmem:[%s614_s3 + $0x10] sm:$0xff]  ;;  %v63_v8 = vunpack.c.l.s8.bf16 %v61_v5  ;;  %v65_v9 = vunpack.c.l.s8.bf16 %v62_v6  ;;  %v208_v10 = vld [vmem:[%s614_s3] sm:$0xff]  ;;  %v211_v11 = vld [vmem:[%s614_s3 + $0x18] sm:$0xff] }
   0x4   :  { %384 = vmatprep.subr.bf16.mxu0 %v431_v1  ;;  %407 = vmatprep.subr.bf16.mxu1 %v431_v1  ;;  %v209_v12 = vld [vmem:[%s614_s3 + $0x8] sm:$0xff] }
   0x5   :  { %228 = vperm.xlu1 %429, %v210_v7   ;;  %218 = vperm.xlu0 %428, %v208_v10  }
   0x7   :  { %385 = vmatpush3.bf16.msra.mxu0 %v431_v1  ;;  %415 = vmatpush3.bf16.msra.mxu1 %v431_v1 }
   0x8   :  { %386 = vmatprep.subr.bf16.mxu0 %v432_v3  ;;  %408 = vmatprep.subr.bf16.mxu1 %v432_v3 }
   0xb   :  { %387 = vmatpush3.bf16.msra.mxu0 %v432_v3  ;;  %416 = vmatpush3.bf16.msra.mxu1 %v432_v3 }
   0xc   :  { %9 = vsyncpa [#allocation4], 0  ;;  %388 = vmatprep.subr.bf16.mxu0 %v433_v4  ;;  %409 = vmatprep.subr.bf16.mxu1 %v433_v4  ;;  %v434_v13 = vld [vmem:[%s612_s1 + $0x20] sm:$0xff]   ;;  %vm23_vm0 = vcmask 523264   ;;  %v463_v14 = vmov 0.0   ;;  %v213_v15 = vld [vmem:[%s614_s3 + $0x28] sm:$0xff]  ;;  %v64_v22 = vunpack.c.h.s8.bf16 %v61_v5  ;;  %v66_v23 = vunpack.c.h.s8.bf16 %v62_v6 }
   0xd   :  { %398 = vmatprep.mubr.bf16.mxu0 %v63_v8  ;;  %402 = vmatprep.mubr.bf16.mxu1 %v65_v9  ;;  %26 = vst.msk [vmem:[#allocation2 + $0x10] sm:$0xff] %vm23_vm0, %v463_v14  ;;  %24 = vst.msk [vmem:[#allocation2] sm:$0xff] %vm23_vm0, %v463_v14  ;;  %v212_v16 = vld [vmem:[%s614_s3 + $0x20] sm:$0xff]  ;;  %v435_v17 = vld [vmem:[%s612_s1 + $0x28] sm:$0xff]   ;;  %s464_s6 = smov 64  }
   0xe   :  { %233 = vperm.xlu1 %429, %v211_v11   ;;  %223 = vperm.xlu0 %428, %v209_v12   ;;  %25 = vst.msk [vmem:[#allocation2 + $0x8] sm:$0xff] %vm23_vm0, %v463_v14  ;;  %27 = vst.msk [vmem:[#allocation2 + $0x18] sm:$0xff] %vm23_vm0, %v463_v14  ;;  %v215_v18 = vld [vmem:[%s614_s3 + $0x38] sm:$0xff]  ;;  %v214_v19 = vld [vmem:[%s614_s3 + $0x30] sm:$0xff] }
   0xf   :  { %28 = vst.msk [vmem:[#allocation2 + $0x20] sm:$0xff] %vm23_vm0, %v463_v14  ;;  %29 = vst.msk [vmem:[#allocation2 + $0x28] sm:$0xff] %vm23_vm0, %v463_v14  ;;  %389 = vmatpush3.bf16.msra.mxu0 %v433_v4  ;;  %417 = vmatpush3.bf16.msra.mxu1 %v433_v4  ;;  %v436_v20 = vld [vmem:[%s612_s1 + $0x30] sm:$0xff]   ;;  %v437_v21 = vld [vmem:[%s612_s1 + $0x38] sm:$0xff]  }
  0x10   :  { %30 = vst.msk [vmem:[#allocation2 + $0x30] sm:$0xff] %vm23_vm0, %v463_v14  ;;  %31 = vst.msk [vmem:[#allocation2 + $0x38] sm:$0xff] %vm23_vm0, %v463_v14  ;;  %390 = vmatprep.subr.bf16.mxu0 %v434_v13  ;;  %410 = vmatprep.subr.bf16.mxu1 %v434_v13  ;;  %v266_v58 = vld [vmem:[%s613_s2 + $0x10] sm:$0xff]  ;;  %v267_v5 = vld [vmem:[%s613_s2 + $0x18] sm:$0xff] }
  0x11   :  { %v264_v6 = vld [vmem:[%s613_s2] sm:$0xff]  ;;  %v265_v14 = vld [vmem:[%s613_s2 + $0x8] sm:$0xff] }
  0x12   :  { %243 = vperm.xlu1 %429, %v213_v15   ;;  %238 = vperm.xlu0 %428, %v212_v16  }
  0x13   :  { %391 = vmatpush3.bf16.msra.mxu0 %v434_v13  ;;  %418 = vmatpush3.bf16.msra.mxu1 %v434_v13 }
  0x14   :  { %392 = vmatprep.subr.bf16.mxu0 %v435_v17  ;;  %411 = vmatprep.subr.bf16.mxu1 %v435_v17  ;;  %v55_v25 = vld [vmem:[#allocation2 + $0x10] sm:$0xff]  ;;  %v53_v28 = vld [vmem:[#allocation2] sm:$0xff] }
  0x15   :  { %v56_v33 = vld [vmem:[#allocation2 + $0x18] sm:$0xff]  ;;  %v54_v39 = vld [vmem:[#allocation2 + $0x8] sm:$0xff] }
  0x16   :  { %253 = vperm.xlu1 %429, %v215_v18   ;;  %248 = vperm.xlu0 %428, %v214_v19   ;;  %v57_v29 = vld [vmem:[#allocation2 + $0x20] sm:$0xff]  ;;  %v58_v40 = vld [vmem:[#allocation2 + $0x28] sm:$0xff] }
  0x17   :  { %393 = vmatpush3.bf16.msra.mxu0 %v435_v17  ;;  %419 = vmatpush3.bf16.msra.mxu1 %v435_v17  ;;  %v59_v26 = vld [vmem:[#allocation2 + $0x30] sm:$0xff]  ;;  %v60_v34 = vld [vmem:[#allocation2 + $0x38] sm:$0xff] }
  0x18   :  { %394 = vmatprep.subr.bf16.mxu0 %v436_v20  ;;  %412 = vmatprep.subr.bf16.mxu1 %v436_v20 }
  0x1b   :  { %395 = vmatpush3.bf16.msra.mxu0 %v436_v20  ;;  %420 = vmatpush3.bf16.msra.mxu1 %v436_v20  ;;  %v268_v20 = vld [vmem:[%s613_s2 + $0x20] sm:$0xff] }
  0x1c   :  { %396 = vmatprep.subr.bf16.mxu0 %v437_v21  ;;  %413 = vmatprep.subr.bf16.mxu1 %v437_v21 }
  0x1f   :  { %397 = vmatpush3.bf16.msra.mxu0 %v437_v21  ;;  %421 = vmatpush3.bf16.msra.mxu1 %v437_v21 }
  0x22   :  { %399 = vmatmul.mubr.bf16.vlgmr.msra.gmra.mrb[0].mxu0 %v64_v22  ;;  %403 = vmatmul.mubr.bf16.vlgmr.msra.gmra.mrb[0].mxu1 %v66_v23 }
  0x84   :  { %v219_v24 = vpop.permute.xlu0 %218  ;;  %v229_v27 = vpop.permute.xlu1 %228 }
  0x8d   :  { %v224_v30 = vpop.permute.xlu0 %223  ;;  %v234_v51 = vpop.permute.xlu1 %233 }
  0x91   :  { %v239_v52 = vpop.permute.xlu0 %238  ;;  %v244_v57 = vpop.permute.xlu1 %243 }
  0x95   :  { %v249_v0 = vpop.permute.xlu0 %248  ;;  %v254_v19 = vpop.permute.xlu1 %253 }
  0xf5   :  { %v400_v31 = vpop.f32.mrb[0].mxu0  ;;  %v404_v32 = vpop.f32.mrb[0].mxu1 }
  0xf6   :  { %v182_v35 = vadd.f32 %v400_v31, %v55_v25  ;;  %v186_v36 = vadd.f32 %v404_v32, %v59_v26  ;;  %v149_v37 = vpop.f32.mrb[1].mxu0  ;;  %v165_v38 = vpop.f32.mrb[1].mxu1  ;;  %v269_v25 = vld [vmem:[%s613_s2 + $0x28] sm:$0xff] }
  0xf7   :  { %v180_v41 = vadd.f32 %v149_v37, %v53_v28  ;;  %v184_v42 = vadd.f32 %v165_v38, %v57_v29  ;;  %v401_v43 = vpop.f32.mrb[2].mxu0  ;;  %v405_v44 = vpop.f32.mrb[2].mxu1  ;;  %v270_v29 = vld [vmem:[%s613_s2 + $0x30] sm:$0xff] }
  0xf8   :  { %191 = vst.msk [vmem:[#allocation2 + $0x10] sm:$0xff] %vm23_vm0, %v182_v35  ;;  %195 = vst.msk [vmem:[#allocation2 + $0x30] sm:$0xff] %vm23_vm0, %v186_v36  ;;  %v183_v45 = vadd.f32 %v401_v43, %v56_v33  ;;  %v187_v46 = vadd.f32 %v405_v44, %v60_v34  ;;  %v152_v47 = vpop.f32.mrb[3].mxu0  ;;  %v168_v48 = vpop.f32.mrb[3].mxu1  ;;  %v271_v33 = vld [vmem:[%s613_s2 + $0x38] sm:$0xff]  ;;  %s465_s2 = smov [#allocation3]  }
  0xf9   :  { %189 = vst.msk [vmem:[#allocation2] sm:$0xff] %vm23_vm0, %v180_v41  ;;  %193 = vst.msk [vmem:[#allocation2 + $0x20] sm:$0xff] %vm23_vm0, %v184_v42  ;;  %v181_v49 = vadd.f32 %v152_v47, %v54_v39  ;;  %v185_v50 = vadd.f32 %v168_v48, %v58_v40  ;;  %s349_s12 = sshll.u32 %s465_s2, 4  ;;  %s350_s12 = int_to_ptr.vmem [resolvable:$true] %s349_s12 }
  0xfa   :  { %192 = vst.msk [vmem:[#allocation2 + $0x18] sm:$0xff] %vm23_vm0, %v183_v45  ;;  %196 = vst.msk [vmem:[#allocation2 + $0x38] sm:$0xff] %vm23_vm0, %v187_v46  ;;  %s438_s13 = scalar_lea.vmem %s350_s12, 1024  ;;  %p443_p1 = scmp.lt.s32.totalorder %s350_s12, %s350_s12 }
  0xfb   :  { %190 = vst.msk [vmem:[#allocation2 + $0x8] sm:$0xff] %vm23_vm0, %v181_v49  ;;  %194 = vst.msk [vmem:[#allocation2 + $0x28] sm:$0xff] %vm23_vm0, %v185_v50  ;;  %p439_p0 = scmp.ne.s32.totalorder %s350_s12, %s438_s13  ;;  %p444_p2 = scmp.lt.s32.totalorder %s438_s13, %s438_s13 }
  0xfd   :  { %p445_p3 = por %p444_p2, %p443_p1 }
  0xff   :  { %v202_v53 = vld [vmem:[#allocation2 + $0x10] sm:$0xff]  ;;  %p446_p4 = pnand %p445_p3, %p439_p0 }
 0x100   :  { %v204_v54 = vld [vmem:[#allocation2 + $0x20] sm:$0xff]  ;;  %v258_v55 = vmul.f32 %v229_v27, %v202_v53  ;;  %v206_v1 = vld [vmem:[#allocation2 + $0x30] sm:$0xff] }
 0x101   :  { %v200_v56 = vld [vmem:[#allocation2] sm:$0xff]  ;;  %v203_v59 = vld [vmem:[#allocation2 + $0x18] sm:$0xff]  ;;  %v566_v63 = vmul.f32 %v239_v52, %v204_v54  ;;  %v262_v13 = vmul.f32 %v249_v0, %v206_v1 }
 0x102   :  { %v256_v60 = vmul.f32 %v219_v24, %v200_v56  ;;  %v205_v61 = vld [vmem:[#allocation2 + $0x28] sm:$0xff]  ;;  %v274_v2 = vmul.f32 3.0, %v258_v55  ;;  %v259_v3 = vmul.f32 %v234_v51, %v203_v59  ;;  %v207_v12 = vld [vmem:[#allocation2 + $0x38] sm:$0xff] }
 0x103   :  { %v201_v62 = vld [vmem:[#allocation2 + $0x8] sm:$0xff]  ;;  %v261_v8 = vmul.f32 %v244_v57, %v205_v61  ;;  %v276_v15 = vmul.f32 3.0, %v566_v63  ;;  %v263_v22 = vmul.f32 %v254_v19, %v207_v12  ;;  %v278_v26 = vmul.f32 3.0, %v262_v13 }
 0x104   :  { %v257_v4 = vmul.f32 %v224_v30, %v201_v62  ;;  %v272_v7 = vmul.f32 3.0, %v256_v60  ;;  %v282_v9 = vadd.f32 %v274_v2, %v266_v58  ;;  %v275_v10 = vmul.f32 3.0, %v259_v3 }
 0x105   :  { %v277_v21 = vmul.f32 3.0, %v261_v8  ;;  %v284_v28 = vadd.f32 %v276_v15, %v268_v20  ;;  %v279_v30 = vmul.f32 3.0, %v263_v22  ;;  %v286_v35 = vadd.f32 %v278_v26, %v270_v29 }
 0x106   :  { %v273_v11 = vmul.f32 3.0, %v257_v4  ;;  %v290_v16 = vmul.f32 0.25, %v282_v9  ;;  %v283_v17 = vadd.f32 %v275_v10, %v267_v5  ;;  %v280_v18 = vadd.f32 %v272_v7, %v264_v6 }
 0x107   :  { %v285_v32 = vadd.f32 %v277_v21, %v269_v25  ;;  %v292_v34 = vmul.f32 0.25, %v284_v28  ;;  %v287_v37 = vadd.f32 %v279_v30, %v271_v33  ;;  %v294_v38 = vmul.f32 0.25, %v286_v35 }
 0x108   :  { %308 = vrot.lane.b32.xlu0 %v290_v16, %s464_s6  ;;  %v291_v23 = vmul.f32 0.25, %v283_v17  ;;  %v281_v24 = vadd.f32 %v273_v11, %v265_v14  ;;  %v288_v27 = vmul.f32 0.25, %v280_v18 }
 0x109   :  { %v293_v36 = vmul.f32 0.25, %v285_v32  ;;  %v295_v39 = vmul.f32 0.25, %v287_v37 }
 0x10a   :  { %310 = vrot.lane.b32.xlu1 %v291_v23, %s464_s6  ;;  %v289_v31 = vmul.f32 0.25, %v281_v24 }
 0x10c   :  { %304 = vrot.lane.b32.xlu0 %v288_v27, %s464_s6 }
 0x10e   :  { %306 = vrot.lane.b32.xlu1 %v289_v31, %s464_s6 }
 0x110   :  { %312 = vrot.lane.b32.xlu0 %v292_v34, %s464_s6 }
 0x112   :  { %314 = vrot.lane.b32.xlu1 %v293_v36, %s464_s6 }
 0x114   :  { %316 = vrot.lane.b32.xlu0 %v294_v38, %s464_s6 }
 0x116   :  { %318 = vrot.lane.b32.xlu1 %v295_v39, %s464_s6 }
 0x17a   :  { %v309_v40 = vpop.permute.xlu0 %308 }
 0x17b   :  { %v330_v41 = vsel %vm23_vm0, %v258_v55, %v309_v40 }
 0x17c   :  { %338 = vst [vmem:[#allocation3 + $0x10] sm:$0xff] %v330_v41  ;;  %v311_v42 = vpop.permute.xlu1 %310 }
 0x17d   :  { %v331_v43 = vsel %vm23_vm0, %v259_v3, %v311_v42 }
 0x17e   :  { %339 = vst [vmem:[#allocation3 + $0x18] sm:$0xff] %v331_v43  ;;  %v305_v44 = vpop.permute.xlu0 %304 }
 0x17f   :  { %v328_v45 = vsel %vm23_vm0, %v256_v60, %v305_v44 }
 0x180   :  { %336 = vst [vmem:[#allocation3] sm:$0xff] %v328_v45  ;;  %v307_v46 = vpop.permute.xlu1 %306 }
 0x181   :  { %v329_v47 = vsel %vm23_vm0, %v257_v4, %v307_v46 }
 0x182   :  { %337 = vst [vmem:[#allocation3 + $0x8] sm:$0xff] %v329_v47  ;;  %v313_v48 = vpop.permute.xlu0 %312 }
 0x183   :  { %v332_v49 = vsel %vm23_vm0, %v566_v63, %v313_v48 }
 0x184   :  { %340 = vst [vmem:[#allocation3 + $0x20] sm:$0xff] %v332_v49  ;;  %v315_v50 = vpop.permute.xlu1 %314 }
 0x185   :  { %v333_v51 = vsel %vm23_vm0, %v261_v8, %v315_v50 }
 0x186   :  { %341 = vst [vmem:[#allocation3 + $0x28] sm:$0xff] %v333_v51  ;;  %v317_v52 = vpop.permute.xlu0 %316 }
 0x187   :  { %v334_v53 = vsel %vm23_vm0, %v262_v13, %v317_v52 }
 0x188   :  { %342 = vst [vmem:[#allocation3 + $0x30] sm:$0xff] %v334_v53  ;;  %v319_v54 = vpop.permute.xlu1 %318 }
 0x189   :  { %v335_v55 = vsel %vm23_vm0, %v263_v22, %v319_v54 }
 0x18a   :  { %343 = vst [vmem:[#allocation3 + $0x38] sm:$0xff] %v335_v55 }
 0x18b   :  { %449 = shalt.err (!%p446_p4)
}
 0x18c   :  { %s450_s16 = scalar_lea.hbm %s615_s4, 1024 }
 0x18d   :  { %p451_p5 = scmp.ne.s32.totalorder %s615_s4, %s450_s16  ;;  %p454_p6 = scmp.lt.u32.totalorder %s450_s16, %s615_s4 }
 0x18f   :  { %p456_p7 = pnand %p454_p6, %p451_p5 }
 0x191   :  { %459 = shalt.err (!%p456_p7)
}
 0x192   :  { %s466_s21 = smov 128   ;;  %s467_s22 = smov 8  }
 0x193   :  { %355 = dma.vmem_to_hbm [thread:$0]  %s350_s12, 1024, %s615_s4, [#allocation4], %s466_s21, %s466_s21, %s467_s22  }
 0x194   :  { %460 = dma.done.wait [#allocation4], 1024  }
 0x195   :  { %461 = vsyncadd [#allocation4], 4294966272 }
 0x196   :  { %359 = vsyncpa [#allocation4], 1 }

</bundles_post_ra>
